<compile_context>
chip_gen: v6e
topology: v6e:2x2x1
jax: 0.10.0
libtpu: 0.0.40
codegen_flags: <defaults>
</compile_context>

<pallas_src>
import jax
import jax.numpy as jnp
from jax.experimental import pallas as pl
from jax.experimental.pallas import tpu as pltpu

GROUP = 8  # batch rows packed per sublane row (block-diagonal weight trick)


def _mlp_kernel(x_ref, w1_ref, b1_ref, w2_ref, b2_ref, w3_ref, b3_ref, o_ref):
    x = x_ref[...]
    # fc1 + ReLU (on packed, block-diagonal weights)
    h1 = jnp.dot(x, w1_ref[...], preferred_element_type=jnp.float32) + b1_ref[...]
    h1 = jnp.maximum(h1, 0.0)
    # fc2 + ReLU
    h2 = jnp.dot(h1, w2_ref[...], preferred_element_type=jnp.float32) + b2_ref[...]
    h2 = jnp.maximum(h2, 0.0)
    # fc3 (no activation)
    o_ref[...] = jnp.dot(h2, w3_ref[...], preferred_element_type=jnp.float32) + b3_ref[...]


def small_mlp_forward(x, params, tile_b=8192):
    """Fused SmallMLP forward. x: (B, 10) f32; params as from init_params."""
    w1, b1, w2, b2, w3, b3 = params
    B, in_dim = x.shape
    h1_dim = w1.shape[1]
    h2_dim = w2.shape[1]
    out_dim = w3.shape[1]

    # ---- 8-row sublane packing with block-diagonal weights -----------------
    eye = jnp.eye(GROUP, dtype=w1.dtype)
    w1p = jnp.kron(eye, w1)                     # (80, 400)
    w2p = jnp.kron(eye, w2)                     # (400, 160)
    w3p = jnp.kron(eye, w3)                     # (160, 16)
    b1p = jnp.tile(b1, (1, GROUP))              # (1, 400)
    b2p = jnp.tile(b2, (1, GROUP))              # (1, 160)
    b3p = jnp.tile(b3, (1, GROUP))              # (1, 16)

    # ---- batch tile (in original rows) --------------------------------------
    # Multiple of 64 so the packed tile (tb/8 rows) is a multiple of 8 sublanes.
    # Cap at 32768: double-buffered packed x/out blocks + layer intermediates
    # stay ~22 MiB, inside the 48 MiB scoped limit below and under v7x's VMEM.
    tb = min(int(tile_b), 32768, max(B, 1))
    tb = max(64, ((tb + 63) // 64) * 64)

    b_pad = ((B + tb - 1) // tb) * tb
    x_p = x if b_pad == B else jnp.pad(x, ((0, b_pad - B), (0, 0)))
    x_packed = x_p.reshape(b_pad // GROUP, GROUP * in_dim)  # free, row-major

    tbp = tb // GROUP
    grid = (b_pad // tb,)

    def resident_spec(a):
        # Whole-array block, constant index_map: DMA'd once, VMEM-resident.
        return pl.BlockSpec(a.shape, lambda i: (0,) * a.ndim)

    flops = 2 * b_pad * (in_dim * h1_dim + h1_dim * h2_dim + h2_dim * out_dim)
    bytes_accessed = 4 * (
        b_pad * (in_dim + out_dim)
        + w1p.size + b1p.size + w2p.size + b2p.size + w3p.size + b3p.size)

    out_packed = pl.pallas_call(
        _mlp_kernel,
        out_shape=jax.ShapeDtypeStruct((b_pad // GROUP, GROUP * out_dim), jnp.float32),
        grid=grid,
        in_specs=[
            pl.BlockSpec((tbp, GROUP * in_dim), lambda i: (i, 0)),  # streamed x tiles
            resident_spec(w1p), resident_spec(b1p),
            resident_spec(w2p), resident_spec(b2p),
            resident_spec(w3p), resident_spec(b3p),
        ],
        out_specs=pl.BlockSpec((tbp, GROUP * out_dim), lambda i: (i, 0)),
        compiler_params=pltpu.CompilerParams(
            dimension_semantics=("parallel",),
            vmem_limit_bytes=48 * 1024 * 1024),
        cost_estimate=pl.CostEstimate(
            flops=flops, transcendentals=0, bytes_accessed=bytes_accessed),
    )(x_packed, w1p, b1p, w2p, b2p, w3p, b3p)

    # Unpack: (B/8, 16) -> (B, 2) is a free row-major reshape; drop padding.
    return out_packed.reshape(b_pad, out_dim)[:B]


def init_params(key):
    """Deterministic init mimicking PyTorch nn.Linear default:
    uniform(-1/sqrt(fan_in), 1/sqrt(fan_in)) for weights and biases.
    Weights stored (in_features, out_features) = transpose of nn.Linear.weight."""
    dims = [(10, 50), (50, 20), (20, 2)]
    params = []
    for (fan_in, fan_out) in dims:
        key, kw, kb = jax.random.split(key, 3)
        bound = 1.0 / jnp.sqrt(fan_in)
        w = jax.random.uniform(kw, (fan_in, fan_out), jnp.float32, -bound, bound)
        # Bias kept 2D (1, fan_out) so it tiles cleanly into VMEM and broadcasts.
        b = jax.random.uniform(kb, (1, fan_out), jnp.float32, -bound, bound)
        params += [w, b]
    return tuple(params)


def reference_forward(x, params):
    w1, b1, w2, b2, w3, b3 = params
    h1 = jnp.maximum(x @ w1 + b1, 0.0)
    h2 = jnp.maximum(h1 @ w2 + b2, 0.0)
    return h2 @ w3 + b3


if __name__ == "__main__":
    key = jax.random.PRNGKey(0)
    key, kx1, kx2 = jax.random.split(key, 3)
    params = init_params(key)

    # Small-shape check (single tile, heavy padding path).
    B = 8
    x = jax.random.normal(kx1, (B, 10), jnp.float32)
    out = jax.block_until_ready(small_mlp_forward(x, params))
    ref = reference_forward(x, params)
    assert out.shape == (B, 2), out.shape
    assert jnp.allclose(out, ref, atol=1e-5, rtol=1e-5), "mismatch vs reference (B=8)"

    # Multi-tile check: exercises the batch grid, packing and padding paths.
    B2 = 300
    x2 = jax.random.normal(kx2, (B2, 10), jnp.float32)
    out2 = jax.block_until_ready(small_mlp_forward(x2, params, tile_b=128))
    ref2 = reference_forward(x2, params)
    assert out2.shape == (B2, 2), out2.shape
    assert jnp.allclose(out2, ref2, atol=1e-5, rtol=1e-5), "mismatch vs reference (B=300)"

    # Default (large) tile path.
    out3 = jax.block_until_ready(small_mlp_forward(x2, params))
    assert jnp.allclose(out3, ref2, atol=1e-5, rtol=1e-5), "mismatch vs reference (default tile)"

    print("KERNEL_OK")
</pallas_src>

<mosaic_0001>
module attributes {stable_mosaic.version = 11 : i64} {
  func.func @_mlp_kernel(%arg0: i32, %arg1: memref<8x80xf32, #tpu.memory_space<vmem>>, %arg2: memref<80x400xf32, #tpu.memory_space<vmem>>, %arg3: memref<1x400xf32, #tpu.memory_space<vmem>>, %arg4: memref<400x160xf32, #tpu.memory_space<vmem>>, %arg5: memref<1x160xf32, #tpu.memory_space<vmem>>, %arg6: memref<160x16xf32, #tpu.memory_space<vmem>>, %arg7: memref<1x16xf32, #tpu.memory_space<vmem>>, %arg8: memref<8x16xf32, #tpu.memory_space<vmem>>) attributes {dimension_semantics = [#tpu.dimension_semantics<parallel>], iteration_bounds = array<i64: 1>, scalar_prefetch = 0 : i64, scratch_operands = 0 : i64, tpu.core_type = #tpu.core_type<tc>, window_params = [{transform_indices = @transform_0, window_bounds = array<i64: 8, 80>}, {pipeline_mode = #tpu.pipeline_mode<synchronous>, transform_indices = @transform_1, window_bounds = array<i64: 80, 400>}, {pipeline_mode = #tpu.pipeline_mode<synchronous>, transform_indices = @transform_2, window_bounds = array<i64: 1, 400>}, {pipeline_mode = #tpu.pipeline_mode<synchronous>, transform_indices = @transform_3, window_bounds = array<i64: 400, 160>}, {pipeline_mode = #tpu.pipeline_mode<synchronous>, transform_indices = @transform_4, window_bounds = array<i64: 1, 160>}, {pipeline_mode = #tpu.pipeline_mode<synchronous>, transform_indices = @transform_5, window_bounds = array<i64: 160, 16>}, {pipeline_mode = #tpu.pipeline_mode<synchronous>, transform_indices = @transform_6, window_bounds = array<i64: 1, 16>}, {transform_indices = @transform_7, window_bounds = array<i64: 8, 16>}]} {
    %c0 = arith.constant 0 : index
    %c0_0 = arith.constant 0 : index
    %0 = vector.load %arg1[%c0, %c0_0] : memref<8x80xf32, #tpu.memory_space<vmem>>, vector<8x80xf32>
    %c0_1 = arith.constant 0 : index
    %c0_2 = arith.constant 0 : index
    %1 = vector.load %arg2[%c0_1, %c0_2] : memref<80x400xf32, #tpu.memory_space<vmem>>, vector<80x400xf32>
    %cst = arith.constant dense<0.000000e+00> : vector<8x400xf32>
    %2 = tpu.matmul %0, %1, %cst {dimension_numbers = #tpu.dot_dimension_numbers<[1], [0], [0], [1], [0, 0, 1, 1], [], []>} : vector<8x80xf32>, vector<80x400xf32>, vector<8x400xf32> -> vector<8x400xf32>
    %c0_3 = arith.constant 0 : index
    %c0_4 = arith.constant 0 : index
    %3 = vector.load %arg3[%c0_3, %c0_4] : memref<1x400xf32, #tpu.memory_space<vmem>>, vector<1x400xf32>
    %4 = vector.broadcast %3 : vector<1x400xf32> to vector<8x400xf32>
    %5 = arith.addf %2, %4 : vector<8x400xf32>
    %cst_5 = arith.constant 0.000000e+00 : f32
    %6 = vector.broadcast %cst_5 : f32 to vector<8x400xf32>
    %7 = arith.maximumf %5, %6 : vector<8x400xf32>
    %c0_6 = arith.constant 0 : index
    %c0_7 = arith.constant 0 : index
    %8 = vector.load %arg4[%c0_6, %c0_7] : memref<400x160xf32, #tpu.memory_space<vmem>>, vector<400x160xf32>
    %cst_8 = arith.constant dense<0.000000e+00> : vector<8x160xf32>
    %9 = tpu.matmul %7, %8, %cst_8 {dimension_numbers = #tpu.dot_dimension_numbers<[1], [0], [0], [1], [0, 0, 1, 1], [], []>} : vector<8x400xf32>, vector<400x160xf32>, vector<8x160xf32> -> vector<8x160xf32>
    %c0_9 = arith.constant 0 : index
    %c0_10 = arith.constant 0 : index
    %10 = vector.load %arg5[%c0_9, %c0_10] : memref<1x160xf32, #tpu.memory_space<vmem>>, vector<1x160xf32>
    %11 = vector.broadcast %10 : vector<1x160xf32> to vector<8x160xf32>
    %12 = arith.addf %9, %11 : vector<8x160xf32>
    %cst_11 = arith.constant 0.000000e+00 : f32
    %13 = vector.broadcast %cst_11 : f32 to vector<8x160xf32>
    %14 = arith.maximumf %12, %13 : vector<8x160xf32>
    %c0_12 = arith.constant 0 : index
    %c0_13 = arith.constant 0 : index
    %15 = vector.load %arg6[%c0_12, %c0_13] : memref<160x16xf32, #tpu.memory_space<vmem>>, vector<160x16xf32>
    %cst_14 = arith.constant dense<0.000000e+00> : vector<8x16xf32>
    %16 = tpu.matmul %14, %15, %cst_14 {dimension_numbers = #tpu.dot_dimension_numbers<[1], [0], [0], [1], [0, 0, 1, 1], [], []>} : vector<8x160xf32>, vector<160x16xf32>, vector<8x16xf32> -> vector<8x16xf32>
    %c0_15 = arith.constant 0 : index
    %c0_16 = arith.constant 0 : index
    %17 = vector.load %arg7[%c0_15, %c0_16] : memref<1x16xf32, #tpu.memory_space<vmem>>, vector<1x16xf32>
    %18 = vector.broadcast %17 : vector<1x16xf32> to vector<8x16xf32>
    %19 = arith.addf %16, %18 : vector<8x16xf32>
    %c0_17 = arith.constant 0 : index
    %c0_18 = arith.constant 0 : index
    %20 = vector.load %arg8[%c0_17, %c0_18] : memref<8x16xf32, #tpu.memory_space<vmem>>, vector<8x16xf32>
    tpu.vector_store %arg8[%c0_17, %c0_18], %19 {strides = array<i32>} : memref<8x16xf32, #tpu.memory_space<vmem>>, vector<8x16xf32>,
    return
  }
  func.func @transform_0(%arg0: i32) -> (i32, i32) {
    %c0_i32 = arith.constant 0 : i32
    %c0_i32_0 = arith.constant 0 : i32
    return %arg0, %c0_i32 : i32, i32
  }
  func.func @transform_1(%arg0: i32) -> (i32, i32) {
    %c0_i32 = arith.constant 0 : i32
    %c0_i32_0 = arith.constant 0 : i32
    %c0_i32_1 = arith.constant 0 : i32
    return %c0_i32, %c0_i32_0 : i32, i32
  }
  func.func @transform_2(%arg0: i32) -> (i32, i32) {
    %c0_i32 = arith.constant 0 : i32
    %c0_i32_0 = arith.constant 0 : i32
    %c0_i32_1 = arith.constant 0 : i32
    return %c0_i32, %c0_i32_0 : i32, i32
  }
  func.func @transform_3(%arg0: i32) -> (i32, i32) {
    %c0_i32 = arith.constant 0 : i32
    %c0_i32_0 = arith.constant 0 : i32
    %c0_i32_1 = arith.constant 0 : i32
    return %c0_i32, %c0_i32_0 : i32, i32
  }
  func.func @transform_4(%arg0: i32) -> (i32, i32) {
    %c0_i32 = arith.constant 0 : i32
    %c0_i32_0 = arith.constant 0 : i32
    %c0_i32_1 = arith.constant 0 : i32
    return %c0_i32, %c0_i32_0 : i32, i32
  }
  func.func @transform_5(%arg0: i32) -> (i32, i32) {
    %c0_i32 = arith.constant 0 : i32
    %c0_i32_0 = arith.constant 0 : i32
    %c0_i32_1 = arith.constant 0 : i32
    return %c0_i32, %c0_i32_0 : i32, i32
  }
  func.func @transform_6(%arg0: i32) -> (i32, i32) {
    %c0_i32 = arith.constant 0 : i32
    %c0_i32_0 = arith.constant 0 : i32
    %c0_i32_1 = arith.constant 0 : i32
    return %c0_i32, %c0_i32_0 : i32, i32
  }
  func.func @transform_7(%arg0: i32) -> (i32, i32) {
    %c0_i32 = arith.constant 0 : i32
    %c0_i32_0 = arith.constant 0 : i32
    return %arg0, %c0_i32 : i32, i32
  }
}

</mosaic_0001>

<bundles_post_ra>
// kernel: tpu_custom_call.1
= control target key start
LH: loop header
LB: loop body
LE: loop exit
PB: predicated region body
PF: predicated region fallthrough
CT: control target
= control target key end

     0   :  { %vm90_vm0 = vcmask 654336   ;;  %v645_v41 = vmov 0.0   ;;  %s1220_s0 = inlined_call_operand.vmem [shape: f32[8,80], index: 0, kind: input, shape index: {}]   ;;  %s1221_s1 = inlined_call_operand.vmem [shape: f32[80,400], index: 1, kind: input, shape index: {}]   ;;  %s1222_s2 = inlined_call_operand.vmem [shape: f32[1,400], index: 2, kind: input, shape index: {}]   ;;  %s1223_s3 = inlined_call_operand.vmem [shape: f32[400,160], index: 3, kind: input, shape index: {}]   ;;  %s1224_s4 = inlined_call_operand.vmem [shape: f32[1,160], index: 4, kind: input, shape index: {}]   ;;  %s1225_s5 = inlined_call_operand.vmem [shape: f32[160,16], index: 5, kind: input, shape index: {}]   ;;  %s1226_s6 = inlined_call_operand.vmem [shape: f32[1,16], index: 6, kind: input, shape index: {}]   ;;  %s1227_s7 = inlined_call_operand.hbm [shape: f32[8,16], index: 7, kind: output, shape index: {}]  }
   0x1   :  { %v65_v0 = vld [vmem:[%s1221_s1 + $0x128] sm:$0xff]  ;;  %v67_v1 = vld [vmem:[%s1221_s1 + $0x138] sm:$0xff]  ;;  %v64_v2 = vld [vmem:[%s1221_s1 + $0x120] sm:$0xff]  ;;  %158 = vmatprep.mubr.f32.mxu0 %v645_v41  ;;  %229 = vmatprep.mubr.f32.mxu1 %v645_v41 }
   0x2   :  { %106 = vmatprep.subr.mxu0 %v65_v0  ;;  %177 = vmatprep.subr.mxu1 %v67_v1  ;;  %v66_v3 = vld [vmem:[%s1221_s1 + $0x130] sm:$0xff]  ;;  %v61_v4 = vld [vmem:[%s1221_s1 + $0x108] sm:$0xff]  ;;  %v63_v5 = vld [vmem:[%s1221_s1 + $0x118] sm:$0xff] }
   0x3   :  { %107 = vmatpush1.msra.mxu0 %v64_v2  ;;  %178 = vmatpush1.msra.mxu1 %v66_v3  ;;  %v60_v6 = vld [vmem:[%s1221_s1 + $0x100] sm:$0xff]  ;;  %v62_v7 = vld [vmem:[%s1221_s1 + $0x110] sm:$0xff]  ;;  %v57_v8 = vld [vmem:[%s1221_s1 + $0xe8] sm:$0xff] }
   0x4   :  { %108 = vmatprep.subr.mxu0 %v61_v4  ;;  %179 = vmatprep.subr.mxu1 %v63_v5  ;;  %v59_v9 = vld [vmem:[%s1221_s1 + $0xf8] sm:$0xff]  ;;  %v56_v10 = vld [vmem:[%s1221_s1 + $0xe0] sm:$0xff]  ;;  %v58_v11 = vld [vmem:[%s1221_s1 + $0xf0] sm:$0xff] }
   0x5   :  { %109 = vmatpush1.msra.mxu0 %v60_v6  ;;  %180 = vmatpush1.msra.mxu1 %v62_v7  ;;  %v53_v12 = vld [vmem:[%s1221_s1 + $0xc8] sm:$0xff]  ;;  %v55_v13 = vld [vmem:[%s1221_s1 + $0xd8] sm:$0xff]  ;;  %v52_v14 = vld [vmem:[%s1221_s1 + $0xc0] sm:$0xff] }
   0x6   :  { %110 = vmatprep.subr.mxu0 %v57_v8  ;;  %181 = vmatprep.subr.mxu1 %v59_v9  ;;  %v54_v15 = vld [vmem:[%s1221_s1 + $0xd0] sm:$0xff]  ;;  %v49_v16 = vld [vmem:[%s1221_s1 + $0xa8] sm:$0xff]  ;;  %v51_v17 = vld [vmem:[%s1221_s1 + $0xb8] sm:$0xff] }
   0x7   :  { %111 = vmatpush1.msra.mxu0 %v56_v10  ;;  %182 = vmatpush1.msra.mxu1 %v58_v11  ;;  %v48_v18 = vld [vmem:[%s1221_s1 + $0xa0] sm:$0xff]  ;;  %v50_v19 = vld [vmem:[%s1221_s1 + $0xb0] sm:$0xff]  ;;  %v45_v20 = vld [vmem:[%s1221_s1 + $0x88] sm:$0xff] }
   0x8   :  { %112 = vmatprep.subr.mxu0 %v53_v12  ;;  %183 = vmatprep.subr.mxu1 %v55_v13  ;;  %v47_v21 = vld [vmem:[%s1221_s1 + $0x98] sm:$0xff]  ;;  %v44_v22 = vld [vmem:[%s1221_s1 + $0x80] sm:$0xff]  ;;  %v46_v23 = vld [vmem:[%s1221_s1 + $0x90] sm:$0xff] }
   0x9   :  { %113 = vmatpush1.msra.mxu0 %v52_v14  ;;  %184 = vmatpush1.msra.mxu1 %v54_v15  ;;  %v41_v24 = vld [vmem:[%s1221_s1 + $0x68] sm:$0xff]  ;;  %v43_v25 = vld [vmem:[%s1221_s1 + $0x78] sm:$0xff]  ;;  %v40_v26 = vld [vmem:[%s1221_s1 + $0x60] sm:$0xff] }
   0xa   :  { %114 = vmatprep.subr.mxu0 %v49_v16  ;;  %185 = vmatprep.subr.mxu1 %v51_v17  ;;  %v42_v27 = vld [vmem:[%s1221_s1 + $0x70] sm:$0xff]  ;;  %v37_v28 = vld [vmem:[%s1221_s1 + $0x48] sm:$0xff]  ;;  %v39_v29 = vld [vmem:[%s1221_s1 + $0x58] sm:$0xff] }
   0xb   :  { %115 = vmatpush1.msra.mxu0 %v48_v18  ;;  %186 = vmatpush1.msra.mxu1 %v50_v19  ;;  %v36_v30 = vld [vmem:[%s1221_s1 + $0x40] sm:$0xff]  ;;  %v38_v31 = vld [vmem:[%s1221_s1 + $0x50] sm:$0xff]  ;;  %v33_v32 = vld [vmem:[%s1221_s1 + $0x28] sm:$0xff] }
   0xc   :  { %116 = vmatprep.subr.mxu0 %v45_v20  ;;  %187 = vmatprep.subr.mxu1 %v47_v21  ;;  %v35_v33 = vld [vmem:[%s1221_s1 + $0x38] sm:$0xff]  ;;  %v32_v34 = vld [vmem:[%s1221_s1 + $0x20] sm:$0xff]  ;;  %v34_v35 = vld [vmem:[%s1221_s1 + $0x30] sm:$0xff] }
   0xd   :  { %117 = vmatpush1.msra.mxu0 %v44_v22  ;;  %188 = vmatpush1.msra.mxu1 %v46_v23  ;;  %v29_v36 = vld [vmem:[%s1221_s1 + $0x8] sm:$0xff]  ;;  %v31_v37 = vld [vmem:[%s1221_s1 + $0x18] sm:$0xff]  ;;  %v28_v38 = vld [vmem:[%s1221_s1] sm:$0xff] }
   0xe   :  { %118 = vmatprep.subr.mxu0 %v41_v24  ;;  %189 = vmatprep.subr.mxu1 %v43_v25  ;;  %v30_v39 = vld [vmem:[%s1221_s1 + $0x10] sm:$0xff]  ;;  %v27_v40 = vld [vmem:[%s1220_s0] sm:$0xff]  ;;  %v271_v42 = vld [vmem:[%s1223_s3 + $0xf8] sm:$0xff] }
   0xf   :  { %119 = vmatpush1.msra.mxu0 %v40_v26  ;;  %190 = vmatpush1.msra.mxu1 %v42_v27  ;;  %v270_v43 = vld [vmem:[%s1223_s3 + $0xf0] sm:$0xff]  ;;  %v269_v44 = vld [vmem:[%s1223_s3 + $0xe8] sm:$0xff]  ;;  %v268_v45 = vld [vmem:[%s1223_s3 + $0xe0] sm:$0xff] }
  0x10   :  { %120 = vmatprep.subr.mxu0 %v37_v28  ;;  %191 = vmatprep.subr.mxu1 %v39_v29  ;;  %v335_v46 = vld [vmem:[%s1223_s3 + $0x2f8] sm:$0xff]  ;;  %v334_v48 = vld [vmem:[%s1223_s3 + $0x2f0] sm:$0xff]  ;;  %v333_v49 = vld [vmem:[%s1223_s3 + $0x2e8] sm:$0xff] }
  0x11   :  { %121 = vmatpush1.msra.mxu0 %v36_v30  ;;  %192 = vmatpush1.msra.mxu1 %v38_v31  ;;  %v267_v47 = vld [vmem:[%s1223_s3 + $0xd8] sm:$0xff]  ;;  %v266_v50 = vld [vmem:[%s1223_s3 + $0xd0] sm:$0xff]  ;;  %v332_v51 = vld [vmem:[%s1223_s3 + $0x2e0] sm:$0xff] }
  0x12   :  { %122 = vmatprep.subr.mxu0 %v33_v32  ;;  %193 = vmatprep.subr.mxu1 %v35_v33  ;;  %v265_v52 = vld [vmem:[%s1223_s3 + $0xc8] sm:$0xff]  ;;  %v331_v53 = vld [vmem:[%s1223_s3 + $0x2d8] sm:$0xff]  ;;  %v330_v54 = vld [vmem:[%s1223_s3 + $0x2d0] sm:$0xff] }
  0x13   :  { %123 = vmatpush1.msra.mxu0 %v32_v34  ;;  %194 = vmatpush1.msra.mxu1 %v34_v35  ;;  %v264_v55 = vld [vmem:[%s1223_s3 + $0xc0] sm:$0xff]  ;;  %v329_v56 = vld [vmem:[%s1223_s3 + $0x2c8] sm:$0xff]  ;;  %v263_v57 = vld [vmem:[%s1223_s3 + $0xb8] sm:$0xff] }
  0x14   :  { %124 = vmatprep.subr.mxu0 %v29_v36  ;;  %195 = vmatprep.subr.mxu1 %v31_v37  ;;  %v328_v58 = vld [vmem:[%s1223_s3 + $0x2c0] sm:$0xff]  ;;  %v262_v59 = vld [vmem:[%s1223_s3 + $0xb0] sm:$0xff]  ;;  %v327_v60 = vld [vmem:[%s1223_s3 + $0x2b8] sm:$0xff] }
  0x15   :  { %125 = vmatpush1.msra.mxu0 %v28_v38  ;;  %196 = vmatpush1.msra.mxu1 %v30_v39  ;;  %v261_v61 = vld [vmem:[%s1223_s3 + $0xa8] sm:$0xff]  ;;  %v326_v62 = vld [vmem:[%s1223_s3 + $0x2b0] sm:$0xff]  ;;  %v260_v63 = vld [vmem:[%s1223_s3 + $0xa0] sm:$0xff] }
  0x16   :  { %616 = vmatmul.mubr.msk.f32.vlgmr.msra.gmra.mxu0 %vm90_vm0, %v27_v40  ;;  %617 = vmatmul.mubr.msk.f32.vlgmr.msra.gmra.mxu1 %vm90_vm0, %v27_v40  ;;  %v325_v0 = vld [vmem:[%s1223_s3 + $0x2a8] sm:$0xff]  ;;  %v259_v1 = vld [vmem:[%s1223_s3 + $0x98] sm:$0xff]  ;;  %v324_v2 = vld [vmem:[%s1223_s3 + $0x2a0] sm:$0xff] }
  0x17   :  { %356 = vmatprep.subr.mxu0 %v271_v42  ;;  %427 = vmatprep.subr.mxu1 %v335_v46  ;;  %v258_v3 = vld [vmem:[%s1223_s3 + $0x90] sm:$0xff]  ;;  %v323_v4 = vld [vmem:[%s1223_s3 + $0x298] sm:$0xff]  ;;  %v257_v5 = vld [vmem:[%s1223_s3 + $0x88] sm:$0xff] }
  0x18   :  { %357 = vmatpush1.msra.mxu0 %v270_v43  ;;  %428 = vmatpush1.msra.mxu1 %v334_v48  ;;  %v322_v6 = vld [vmem:[%s1223_s3 + $0x290] sm:$0xff]  ;;  %v256_v7 = vld [vmem:[%s1223_s3 + $0x80] sm:$0xff]  ;;  %v321_v8 = vld [vmem:[%s1223_s3 + $0x288] sm:$0xff] }
  0x19   :  { %358 = vmatprep.subr.mxu0 %v269_v44  ;;  %429 = vmatprep.subr.mxu1 %v333_v49  ;;  %v255_v9 = vld [vmem:[%s1223_s3 + $0x78] sm:$0xff]  ;;  %v320_v10 = vld [vmem:[%s1223_s3 + $0x280] sm:$0xff]  ;;  %v254_v11 = vld [vmem:[%s1223_s3 + $0x70] sm:$0xff] }
  0x1a   :  { %359 = vmatpush1.msra.mxu0 %v268_v45  ;;  %430 = vmatpush1.msra.mxu1 %v332_v51  ;;  %v319_v12 = vld [vmem:[%s1223_s3 + $0x278] sm:$0xff]  ;;  %v253_v13 = vld [vmem:[%s1223_s3 + $0x68] sm:$0xff]  ;;  %v318_v14 = vld [vmem:[%s1223_s3 + $0x270] sm:$0xff] }
  0x1b   :  { %360 = vmatprep.subr.mxu0 %v267_v47  ;;  %431 = vmatprep.subr.mxu1 %v331_v53  ;;  %v252_v15 = vld [vmem:[%s1223_s3 + $0x60] sm:$0xff]  ;;  %v317_v16 = vld [vmem:[%s1223_s3 + $0x268] sm:$0xff]  ;;  %v251_v17 = vld [vmem:[%s1223_s3 + $0x58] sm:$0xff] }
  0x1c   :  { %361 = vmatpush1.msra.mxu0 %v266_v50  ;;  %432 = vmatpush1.msra.mxu1 %v330_v54  ;;  %v316_v18 = vld [vmem:[%s1223_s3 + $0x260] sm:$0xff]  ;;  %v250_v19 = vld [vmem:[%s1223_s3 + $0x50] sm:$0xff]  ;;  %v315_v20 = vld [vmem:[%s1223_s3 + $0x258] sm:$0xff] }
  0x1d   :  { %362 = vmatprep.subr.mxu0 %v265_v52  ;;  %433 = vmatprep.subr.mxu1 %v329_v56  ;;  %v249_v21 = vld [vmem:[%s1223_s3 + $0x48] sm:$0xff]  ;;  %v314_v22 = vld [vmem:[%s1223_s3 + $0x250] sm:$0xff] }
  0x1e   :  { %363 = vmatpush1.msra.mxu0 %v264_v55  ;;  %434 = vmatpush1.msra.mxu1 %v328_v58 }
  0x1f   :  { %364 = vmatprep.subr.mxu0 %v263_v57  ;;  %435 = vmatprep.subr.mxu1 %v327_v60 }
  0x20   :  { %365 = vmatpush1.msra.mxu0 %v262_v59  ;;  %436 = vmatpush1.msra.mxu1 %v326_v62 }
  0x21   :  { %366 = vmatprep.subr.mxu0 %v261_v61  ;;  %437 = vmatprep.subr.mxu1 %v325_v0 }
  0x22   :  { %367 = vmatpush1.msra.mxu0 %v260_v63  ;;  %438 = vmatpush1.msra.mxu1 %v324_v2 }
  0x23   :  { %368 = vmatprep.subr.mxu0 %v259_v1  ;;  %439 = vmatprep.subr.mxu1 %v323_v4 }
  0x24   :  { %369 = vmatpush1.msra.mxu0 %v258_v3  ;;  %440 = vmatpush1.msra.mxu1 %v322_v6 }
  0x25   :  { %370 = vmatprep.subr.mxu0 %v257_v5  ;;  %441 = vmatprep.subr.mxu1 %v321_v8 }
  0x26   :  { %371 = vmatpush1.msra.mxu0 %v256_v7  ;;  %442 = vmatpush1.msra.mxu1 %v320_v10 }
  0x27   :  { %372 = vmatprep.subr.mxu0 %v255_v9  ;;  %443 = vmatprep.subr.mxu1 %v319_v12 }
  0x28   :  { %373 = vmatpush1.msra.mxu0 %v254_v11  ;;  %444 = vmatpush1.msra.mxu1 %v318_v14 }
  0x29   :  { %374 = vmatprep.subr.mxu0 %v253_v13  ;;  %445 = vmatprep.subr.mxu1 %v317_v16 }
  0x2a   :  { %375 = vmatpush1.msra.mxu0 %v252_v15 }
  0x2b   :  { %12 = vsyncpa [#allocation3], 0  ;;  %376 = vmatprep.subr.mxu0 %v251_v17  ;;  %v248_v23 = vld [vmem:[%s1223_s3 + $0x40] sm:$0xff]  ;;  %446 = vmatpush1.msra.mxu1 %v316_v18  ;;  %v313_v24 = vld [vmem:[%s1223_s3 + $0x248] sm:$0xff]  ;;  %v70_v15 = vlaneseq  ;;  %vm352_vm1 = vcmask 130048   ;;  %vm527_vm2 = vcmask 261120  }
  0x2c   :  { %377 = vmatpush1.msra.mxu0 %v250_v19  ;;  %v247_v25 = vld [vmem:[%s1223_s3 + $0x38] sm:$0xff]  ;;  %447 = vmatprep.subr.mxu1 %v315_v20  ;;  %v312_v26 = vld [vmem:[%s1223_s3 + $0x240] sm:$0xff]  ;;  %v246_v27 = vld [vmem:[%s1223_s3 + $0x30] sm:$0xff]  ;;  %s646_s27 = smov [#allocation2]  }
  0x2d   :  { %378 = vmatprep.subr.mxu0 %v249_v21  ;;  %448 = vmatpush1.msra.mxu1 %v314_v22  ;;  %v311_v28 = vld [vmem:[%s1223_s3 + $0x238] sm:$0xff]  ;;  %v245_v29 = vld [vmem:[%s1223_s3 + $0x28] sm:$0xff]  ;;  %v310_v30 = vld [vmem:[%s1223_s3 + $0x230] sm:$0xff]  ;;  %v1113_v16 = vshrl.u32 %v70_v15, 7  ;;  %s608_s28 = sshll.u32 %s646_s27, 4  ;;  %s609_s28 = int_to_ptr.vmem [resolvable:$true] %s608_s28 }
  0x2e   :  { %379 = vmatpush1.msra.mxu0 %v248_v23  ;;  %449 = vmatprep.subr.mxu1 %v313_v24  ;;  %v244_v31 = vld [vmem:[%s1223_s3 + $0x20] sm:$0xff]  ;;  %v309_v32 = vld [vmem:[%s1223_s3 + $0x228] sm:$0xff]  ;;  %v243_v33 = vld [vmem:[%s1223_s3 + $0x18] sm:$0xff]  ;;  %s623_s29 = scalar_lea.vmem %s609_s28, 128  ;;  %p628_p1 = scmp.lt.s32.totalorder %s609_s28, %s609_s28 }
  0x2f   :  { %380 = vmatprep.subr.mxu0 %v247_v25  ;;  %450 = vmatpush1.msra.mxu1 %v312_v26  ;;  %v308_v34 = vld [vmem:[%s1223_s3 + $0x220] sm:$0xff]  ;;  %v242_v35 = vld [vmem:[%s1223_s3 + $0x10] sm:$0xff]  ;;  %v241_v36 = vld [vmem:[%s1223_s3 + $0x8] sm:$0xff]  ;;  %v80_v17 = vsub.s32 2, %v1113_v16  ;;  %v72_v18 = vsub.s32 0, %v1113_v16  ;;  %v76_v20 = vsub.s32 1, %v1113_v16  ;;  %p624_p0 = scmp.ne.s32.totalorder %s609_s28, %s623_s29  ;;  %p629_p2 = scmp.lt.s32.totalorder %s623_s29, %s623_s29 }
  0x30   :  { %381 = vmatpush1.msra.mxu0 %v246_v27  ;;  %451 = vmatprep.subr.mxu1 %v311_v28  ;;  %v240_v37 = vld [vmem:[%s1223_s3] sm:$0xff]  ;;  %v303_v38 = vld [vmem:[%s1223_s3 + $0x1f8] sm:$0xff]  ;;  %v302_v39 = vld [vmem:[%s1223_s3 + $0x1f0] sm:$0xff]  ;;  %v84_v21 = vsub.s32 3, %v1113_v16 }
  0x31   :  { %382 = vmatprep.subr.mxu0 %v245_v29  ;;  %452 = vmatpush1.msra.mxu1 %v310_v30  ;;  %v301_v40 = vld [vmem:[%s1223_s3 + $0x1e8] sm:$0xff]  ;;  %v300_v42 = vld [vmem:[%s1223_s3 + $0x1e0] sm:$0xff]  ;;  %v299_v43 = vld [vmem:[%s1223_s3 + $0x1d8] sm:$0xff]  ;;  %p630_p3 = por %p629_p2, %p628_p1 }
  0x32   :  { %383 = vmatpush1.msra.mxu0 %v244_v31  ;;  %453 = vmatprep.subr.mxu1 %v309_v32  ;;  %v298_v44 = vld [vmem:[%s1223_s3 + $0x1d0] sm:$0xff]  ;;  %v297_v45 = vld [vmem:[%s1223_s3 + $0x1c8] sm:$0xff]  ;;  %v296_v46 = vld [vmem:[%s1223_s3 + $0x1c0] sm:$0xff] }
  0x33   :  { %384 = vmatprep.subr.mxu0 %v243_v33  ;;  %454 = vmatpush1.msra.mxu1 %v308_v34  ;;  %v295_v47 = vld [vmem:[%s1223_s3 + $0x1b8] sm:$0xff]  ;;  %v294_v48 = vld [vmem:[%s1223_s3 + $0x1b0] sm:$0xff]  ;;  %v293_v49 = vld [vmem:[%s1223_s3 + $0x1a8] sm:$0xff]  ;;  %p631_p4 = pnand %p630_p3, %p624_p0 }
  0x34   :  { %385 = vmatpush1.msra.mxu0 %v242_v35  ;;  %v292_v50 = vld [vmem:[%s1223_s3 + $0x1a0] sm:$0xff]  ;;  %v291_v51 = vld [vmem:[%s1223_s3 + $0x198] sm:$0xff]  ;;  %v290_v52 = vld [vmem:[%s1223_s3 + $0x190] sm:$0xff] }
  0x35   :  { %386 = vmatprep.subr.mxu0 %v241_v36  ;;  %v289_v53 = vld [vmem:[%s1223_s3 + $0x188] sm:$0xff]  ;;  %v288_v54 = vld [vmem:[%s1223_s3 + $0x180] sm:$0xff]  ;;  %v287_v55 = vld [vmem:[%s1223_s3 + $0x178] sm:$0xff] }
  0x36   :  { %387 = vmatpush1.msra.mxu0 %v240_v37  ;;  %v286_v56 = vld [vmem:[%s1223_s3 + $0x170] sm:$0xff]  ;;  %v285_v57 = vld [vmem:[%s1223_s3 + $0x168] sm:$0xff]  ;;  %v284_v58 = vld [vmem:[%s1223_s3 + $0x160] sm:$0xff] }
  0x37   :  { %388 = vmatprep.subr.mxu0 %v303_v38  ;;  %v283_v59 = vld [vmem:[%s1223_s3 + $0x158] sm:$0xff]  ;;  %v282_v60 = vld [vmem:[%s1223_s3 + $0x150] sm:$0xff]  ;;  %v281_v61 = vld [vmem:[%s1223_s3 + $0x148] sm:$0xff] }
  0x38   :  { %389 = vmatpush2.msra.mxu0 %v302_v39  ;;  %v280_v62 = vld [vmem:[%s1223_s3 + $0x140] sm:$0xff]  ;;  %v279_v63 = vld [vmem:[%s1223_s3 + $0x138] sm:$0xff]  ;;  %v278_v1 = vld [vmem:[%s1223_s3 + $0x130] sm:$0xff] }
  0x39   :  { %390 = vmatprep.subr.mxu0 %v301_v40  ;;  %v307_v0 = vld [vmem:[%s1223_s3 + $0x218] sm:$0xff]  ;;  %v306_v2 = vld [vmem:[%s1223_s3 + $0x210] sm:$0xff]  ;;  %v277_v3 = vld [vmem:[%s1223_s3 + $0x128] sm:$0xff] }
  0x3a   :  { %391 = vmatpush2.msra.mxu0 %v300_v42  ;;  %455 = vmatprep.subr.mxu1 %v307_v0  ;;  %v305_v4 = vld [vmem:[%s1223_s3 + $0x208] sm:$0xff]  ;;  %v276_v5 = vld [vmem:[%s1223_s3 + $0x120] sm:$0xff]  ;;  %v275_v7 = vld [vmem:[%s1223_s3 + $0x118] sm:$0xff] }
  0x3b   :  { %392 = vmatprep.subr.mxu0 %v299_v43  ;;  %456 = vmatpush1.msra.mxu1 %v306_v2  ;;  %v304_v6 = vld [vmem:[%s1223_s3 + $0x200] sm:$0xff]  ;;  %v339_v8 = vld [vmem:[%s1223_s3 + $0x318] sm:$0xff]  ;;  %v274_v9 = vld [vmem:[%s1223_s3 + $0x110] sm:$0xff] }
  0x3c   :  { %393 = vmatpush2.msra.mxu0 %v298_v44  ;;  %457 = vmatprep.subr.mxu1 %v305_v4  ;;  %v338_v10 = vld [vmem:[%s1223_s3 + $0x310] sm:$0xff]  ;;  %v273_v11 = vld [vmem:[%s1223_s3 + $0x108] sm:$0xff]  ;;  %v272_v13 = vld [vmem:[%s1223_s3 + $0x100] sm:$0xff] }
  0x3d   :  { %394 = vmatprep.subr.mxu0 %v297_v45  ;;  %458 = vmatpush1.msra.mxu1 %v304_v6  ;;  %v337_v12 = vld [vmem:[%s1223_s3 + $0x308] sm:$0xff]  ;;  %v336_v14 = vld [vmem:[%s1223_s3 + $0x300] sm:$0xff]  ;;  %v515_v38 = vld [vmem:[%s1225_s5 + $0x78] sm:$0xff] }
  0x3e   :  { %395 = vmatpush2.msra.mxu0 %v296_v46  ;;  %487 = vmatprep.subr.mxu1 %v339_v8  ;;  %v68_v19 = vld [vmem:[%s1222_s2] sm:$0xf]  ;;  %v514_v39 = vld [vmem:[%s1225_s5 + $0x70] sm:$0xff]  ;;  %v513_v40 = vld [vmem:[%s1225_s5 + $0x68] sm:$0xff] }
  0x3f   :  { %396 = vmatprep.subr.mxu0 %v295_v47  ;;  %488 = vmatpush2.msra.mxu1 %v338_v10  ;;  %v81_v22 = vrot.slane %v68_v19, %v80_v17  ;;  %v73_v23 = vrot.slane %v68_v19, %v72_v18  ;;  %v77_v24 = vrot.slane %v68_v19, %v76_v20  ;;  %v512_v42 = vld [vmem:[%s1225_s5 + $0x60] sm:$0xff]  ;;  %v511_v43 = vld [vmem:[%s1225_s5 + $0x58] sm:$0xff]  ;;  %v510_v44 = vld [vmem:[%s1225_s5 + $0x50] sm:$0xff] }
  0x40   :  { %397 = vmatpush2.msra.mxu0 %v294_v48  ;;  %489 = vmatprep.subr.mxu1 %v337_v12  ;;  %v85_v25 = vrot.slane %v68_v19, %v84_v21  ;;  %v509_v45 = vld [vmem:[%s1225_s5 + $0x48] sm:$0xff]  ;;  %v508_v46 = vld [vmem:[%s1225_s5 + $0x40] sm:$0xff]  ;;  %v507_v47 = vld [vmem:[%s1225_s5 + $0x38] sm:$0xff] }
  0x41   :  { %398 = vmatprep.subr.mxu0 %v293_v49  ;;  %490 = vmatpush2.msra.mxu1 %v336_v14  ;;  %v506_v48 = vld [vmem:[%s1225_s5 + $0x30] sm:$0xff]  ;;  %v505_v49 = vld [vmem:[%s1225_s5 + $0x28] sm:$0xff] }
  0x42   :  { %399 = vmatpush2.msra.mxu0 %v292_v50  ;;  %531 = vmatprep.subr.mxu1 %v645_v41  ;;  %v504_v50 = vld [vmem:[%s1225_s5 + $0x20] sm:$0xff] }
  0x43   :  { %400 = vmatprep.subr.mxu0 %v291_v51  ;;  %v503_v51 = vld [vmem:[%s1225_s5 + $0x18] sm:$0xff] }
  0x44   :  { %401 = vmatpush2.msra.mxu0 %v290_v52  ;;  %v502_v52 = vld [vmem:[%s1225_s5 + $0x10] sm:$0xff] }
  0x45   :  { %402 = vmatprep.subr.mxu0 %v289_v53  ;;  %v501_v53 = vld [vmem:[%s1225_s5 + $0x8] sm:$0xff] }
  0x46   :  { %403 = vmatpush2.msra.mxu0 %v288_v54  ;;  %v500_v54 = vld [vmem:[%s1225_s5] sm:$0xff] }
  0x47   :  { %404 = vmatprep.subr.mxu0 %v287_v55  ;;  %v519_v55 = vld [vmem:[%s1225_s5 + $0x98] sm:$0xff] }
  0x48   :  { %405 = vmatpush2.msra.mxu0 %v286_v56  ;;  %v518_v56 = vld [vmem:[%s1225_s5 + $0x90] sm:$0xff] }
  0x49   :  { %406 = vmatprep.subr.mxu0 %v285_v57  ;;  %v517_v57 = vld [vmem:[%s1225_s5 + $0x88] sm:$0xff] }
  0x4a   :  { %407 = vmatpush2.msra.mxu0 %v284_v58  ;;  %v516_v58 = vld [vmem:[%s1225_s5 + $0x80] sm:$0xff] }
  0x4b   :  { %408 = vmatprep.subr.mxu0 %v283_v59  ;;  %v340_v59 = vld [vmem:[%s1224_s4] sm:$0x3] }
  0x4c   :  { %409 = vmatpush2.msra.mxu0 %v282_v60  ;;  %v345_v60 = vrot.slane %v340_v59, %v72_v18 }
  0x4d   :  { %410 = vmatprep.subr.mxu0 %v281_v61  ;;  %v349_v61 = vrot.slane %v340_v59, %v76_v20 }
  0x4e   :  { %411 = vmatpush2.msra.mxu0 %v280_v62 }
  0x4f   :  { %412 = vmatprep.subr.mxu0 %v279_v63 }
  0x50   :  { %413 = vmatpush2.msra.mxu0 %v278_v1 }
  0x51   :  { %414 = vmatprep.subr.mxu0 %v277_v3 }
  0x52   :  { %415 = vmatpush2.msra.mxu0 %v276_v5 }
  0x53   :  { %416 = vmatprep.subr.mxu0 %v275_v7  ;;  %v619_v7 = vld [vmem:[%s1226_s6] ss:$0 sm:$0xff] }
  0x54   :  { %417 = vmatpush2.msra.mxu0 %v274_v9 }
  0x55   :  { %418 = vmatprep.subr.mxu0 %v273_v11 }
  0x56   :  { %419 = vmatpush2.msra.mxu0 %v272_v13 }
  0xd6   :  { %v160_v26 = vpop.f32.mrf.mxu0  ;;  %v231_v27 = vpop.f32.mrf.mxu1 }
  0xd7   :  { %v232_v28 = vadd.f32 %v231_v27, %v81_v22  ;;  %v161_v29 = vadd.f32 %v160_v26, %v73_v23 }
  0xd8   :  { %v162_v30 = vpop.f32.mrf.mxu0  ;;  %v233_v31 = vpop.f32.mrf.mxu1 }
  0xd9   :  { %v163_v32 = vadd.f32 %v162_v30, %v77_v24  ;;  %v234_v33 = vadd.f32 %v233_v31, %v85_v25  ;;  %v238_v34 = vmax.f32 %v232_v28, 0.0  ;;  %v236_v37 = vmax.f32 %v161_v29, 0.0 }
  0xdb   :  { %v237_v35 = vmax.f32 %v163_v32, 0.0  ;;  %v239_v36 = vmax.f32 %v234_v33, 0.0 }
  0xdd   :  { %420 = vmatprep.mubr.f32.mxu0 %v237_v35  ;;  %618 = vmatprep.mubr.msk.f32.mxu1 %vm352_vm1, %v239_v36 }
  0xde   :  { %421 = vmatmul.mubr.f32.vlgmr.msra.gmra.mxu0 %v236_v37  ;;  %492 = vmatmul.mubr.f32.vlgmr.msra.gmra.mxu1 %v238_v34 }
  0xdf   :  { %532 = vmatpush1.msra.mxu1 %v515_v38 }
  0xe0   :  { %533 = vmatprep.subr.mxu1 %v645_v41 }
  0xe1   :  { %534 = vmatpush1.msra.mxu1 %v514_v39 }
  0xe2   :  { %535 = vmatprep.subr.mxu1 %v645_v41 }
  0xe3   :  { %536 = vmatpush1.msra.mxu1 %v513_v40 }
  0xe4   :  { %537 = vmatprep.subr.mxu1 %v645_v41 }
  0xe5   :  { %538 = vmatpush1.msra.mxu1 %v512_v42 }
  0xe6   :  { %539 = vmatprep.subr.mxu1 %v645_v41 }
  0xe7   :  { %540 = vmatpush1.msra.mxu1 %v511_v43 }
  0xe8   :  { %541 = vmatprep.subr.mxu1 %v645_v41 }
  0xe9   :  { %542 = vmatpush1.msra.mxu1 %v510_v44 }
  0xea   :  { %543 = vmatprep.subr.mxu1 %v645_v41 }
  0xeb   :  { %544 = vmatpush1.msra.mxu1 %v509_v45 }
  0xec   :  { %545 = vmatprep.subr.mxu1 %v645_v41 }
  0xed   :  { %546 = vmatpush1.msra.mxu1 %v508_v46 }
  0xee   :  { %547 = vmatprep.subr.mxu1 %v645_v41 }
  0xef   :  { %548 = vmatpush1.msra.mxu1 %v507_v47 }
  0xf0   :  { %549 = vmatprep.subr.mxu1 %v645_v41 }
  0xf1   :  { %550 = vmatpush1.msra.mxu1 %v506_v48 }
  0xf2   :  { %551 = vmatprep.subr.mxu1 %v645_v41 }
  0xf3   :  { %552 = vmatpush1.msra.mxu1 %v505_v49 }
  0xf4   :  { %553 = vmatprep.subr.mxu1 %v645_v41 }
  0xf5   :  { %554 = vmatpush1.msra.mxu1 %v504_v50 }
  0xf6   :  { %555 = vmatprep.subr.mxu1 %v645_v41 }
  0xf7   :  { %556 = vmatpush1.msra.mxu1 %v503_v51 }
  0xf8   :  { %557 = vmatprep.subr.mxu1 %v645_v41 }
  0xf9   :  { %558 = vmatpush1.msra.mxu1 %v502_v52 }
  0xfa   :  { %559 = vmatprep.subr.mxu1 %v645_v41 }
  0xfb   :  { %560 = vmatpush1.msra.mxu1 %v501_v53 }
  0xfc   :  { %561 = vmatprep.subr.mxu1 %v645_v41 }
  0xfd   :  { %562 = vmatpush1.msra.mxu1 %v500_v54 }
  0xfe   :  { %587 = vmatprep.subr.mxu1 %v645_v41 }
  0xff   :  { %588 = vmatpush2.msra.mxu1 %v519_v55 }
 0x100   :  { %589 = vmatprep.subr.mxu1 %v645_v41 }
 0x101   :  { %590 = vmatpush2.msra.mxu1 %v518_v56 }
 0x102   :  { %591 = vmatprep.subr.mxu1 %v645_v41 }
 0x103   :  { %592 = vmatpush2.msra.mxu1 %v517_v57 }
 0x104   :  { %593 = vmatprep.subr.mxu1 %v645_v41 }
 0x105   :  { %594 = vmatpush2.msra.mxu1 %v516_v58 }
 0x19e   :  { %v422_v62 = vpop.f32.mrf.mxu0  ;;  %v493_v63 = vpop.f32.mrf.mxu1 }
 0x19f   :  { %v423_v0 = vadd.f32 %v422_v62, %v345_v60 }
 0x1a0   :  { %v424_v1 = vpop.f32.mrf.mxu0  ;;  %v495_v4 = vpop.f32.mrf.mxu1 }
 0x1a1   :  { %v425_v2 = vadd.f32 %v424_v1, %v349_v61  ;;  %v494_v3 = vadd.f32 %v493_v63, %v423_v0 }
 0x1a3   :  { %v496_v5 = vadd.f32 %v495_v4, %v425_v2  ;;  %v498_v6 = vmax.f32 %v494_v3, 0.0 }
 0x1a5   :  { %v499_v41 = vmax.f32 %v496_v5, 0.0 }
 0x1a7   :  { %620 = vmatprep.mubr.msk.f32.mxu1 %vm527_vm2, %v499_v41 }
 0x1a8   :  { %596 = vmatmul.mubr.f32.vlgmr.msra.gmra.mxu1 %v498_v6 }
 0x268   :  { %v597_v8 = vpop.f32.mrf.mxu1 }
 0x269   :  { %v598_v9 = vadd.f32 %v619_v7, %v597_v8 }
 0x26a   :  { %v599_v10 = vpop.f32.mrf.mxu1 }
 0x26b   :  { %601 = vst.msk [vmem:[#allocation2] sm:$0xff] %vm352_vm1, %v598_v9 }
 0x26c   :  { %634 = shalt.err (!%p631_p4)
}
 0x26d   :  { %611 = dma.vmem_to_hbm [thread:$0]  %s609_s28, 128, %s1227_s7, [#allocation3]  }
 0x26e   :  { %643 = dma.done.wait [#allocation3], 128  }
 0x26f   :  { %644 = vsyncadd [#allocation3], 4294967168 }
 0x270   :  { %615 = vsyncpa [#allocation3], 1 }

</bundles_post_ra>
